<compile_context>
chip_gen: v6e
topology: v6e:2x2x1
jax: 0.10.0
libtpu: 0.0.40
codegen_flags: <defaults>
</compile_context>

<pallas_src>
import math

import jax
import jax.numpy as jnp
from jax.experimental import pallas as pl
from jax.experimental.pallas import tpu as pltpu


def _patch_embed_kernel(patches_ref, w_ref, posbias_ref, out_ref):
    # patches_ref: (TB, Mp, K)   compute dtype; row 0 of each image is a zero row
    #                            (cls placeholder), rows N+1..Mp-1 are padding.
    # w_ref:       (K, D)        compute dtype (conv weight as matmul weight)
    # posbias_ref: (N+1, D)      f32; [0] = cls_token + pos[0], [1:] = pos[1:] + conv_bias
    # out_ref:     (TB, N+1, D)
    TB, Mp, K = patches_ref.shape
    D = w_ref.shape[1]
    M = out_ref.shape[1]  # N + 1
    # One MXU matmul for the whole batch tile.  Mp % 8 == 0 keeps the reshape a
    # pure (layout-preserving) sublane merge -- no relayout copy.
    emb = jnp.dot(
        patches_ref[...].reshape(TB * Mp, K),
        w_ref[...],
        preferred_element_type=jnp.float32,
    ).reshape(TB, Mp, D)
    # Single aligned full-block store (cls row already included via the zero row).
    out_ref[...] = (emb[:, :M, :] + posbias_ref[...][None]).astype(out_ref.dtype)


def _vmem_limit_bytes():
    """Generation-aware VMEM limit with headroom (v7x: ~48 MiB, v5e/v6e: 96 MiB)."""
    try:
        cap = int(pltpu.get_tpu_info().vmem_capacity_bytes)
    except Exception:
        cap = 64 * 1024 * 1024  # conservative (v7x-sized physical VMEM)
    return min((cap * 3) // 4, 96 * 1024 * 1024)


def _pick_batch_tile(B, Mp, K, D, in_bytes, out_bytes, budget_bytes):
    """Largest TB dividing B whose double-buffered footprint fits the budget."""
    best = 1
    for tb in range(1, B + 1):
        if B % tb:
            continue
        stream = 2 * tb * Mp * K * in_bytes + 2 * tb * Mp * D * out_bytes
        resident = 2 * (K * D * in_bytes + Mp * D * 4)
        scratch = tb * Mp * D * 4  # f32 matmul result
        if stream + resident + scratch > budget_bytes:
            continue
        if B >= 2 and B // tb < 2:
            continue  # keep >= 2 grid steps so both v7x TensorCores have work
        best = tb
    return best


def vit_patch_embedding(x, conv_w, conv_b, cls_token, pos_embed, patch_size,
                        *, compute_dtype=jnp.bfloat16, out_dtype=None,
                        batch_tile=None):
    """x: [B, C, H, W] (NCHW, matching the PyTorch module).  Returns [B, N+1, D]."""
    B, C, H, W = x.shape
    ph, pw = patch_size
    gh, gw = H // ph, W // pw
    N = gh * gw
    D = conv_w.shape[0]
    K = C * ph * pw
    out_dtype = x.dtype if out_dtype is None else out_dtype

    # TODO(synk): only the num_patches-matching path of interpolate_pos_encoding
    # is implemented (the path this forward exercises); bicubic resize is not.
    assert pos_embed.shape[1] == N + 1, "pos_embed / input size mismatch"

    # Pad the per-image row count to a sublane multiple so the in-kernel
    # (TB, Mp, K) -> (TB*Mp, K) reshape is layout-preserving.
    Mp = ((N + 1 + 7) // 8) * 8

    # --- one-time layout glue (done in the compute dtype to halve its HBM traffic) ---
    # TODO(synk): folding this patchify gather into the kernel DMA (index_map over a
    # gh grid axis) would remove this extra HBM round trip over the activations.
    xc = x.astype(compute_dtype)
    patches = xc.reshape(B, C, gh, ph, gw, pw).transpose(0, 2, 4, 1, 3, 5)
    patches = patches.reshape(B, N, K)
    # Row 0 of each image: zero row standing in for the cls token (so the cls row
    # comes out of the same matmul and the store stays fully aligned).
    # Rows N+1..Mp-1: sublane padding, discarded in the kernel.
    patches = jnp.pad(patches, ((0, 0), (1, Mp - 1 - N), (0, 0)))

    # Conv2d weight [D, C, ph, pw] -> matmul weight [K, D]
    w_mat = conv_w.reshape(D, K).T.astype(compute_dtype)
    # posbias[0]  = cls_token + pos[0]   (cls row gets NO conv bias, as in PyTorch)
    # posbias[1:] = pos[1:]   + conv bias
    posbias = jnp.concatenate(
        [cls_token.reshape(1, D) + pos_embed[0, 0:1, :],
         pos_embed[0, 1:, :] + conv_b[None, :]],
        axis=0,
    ).astype(jnp.float32)  # (N+1, D), kept f32 for the accumulate/add path

    vmem_limit = _vmem_limit_bytes()
    in_b = jnp.dtype(compute_dtype).itemsize
    out_b = jnp.dtype(out_dtype).itemsize
    TB = batch_tile or _pick_batch_tile(B, Mp, K, D, in_b, out_b,
                                        int(vmem_limit * 0.8))
    grid = (B // TB,)

    out = pl.pallas_call(
        _patch_embed_kernel,
        out_shape=jax.ShapeDtypeStruct((B, N + 1, D), out_dtype),
        grid_spec=pltpu.PrefetchScalarGridSpec(
            num_scalar_prefetch=0,
            grid=grid,
            in_specs=[
                pl.BlockSpec((TB, Mp, K), lambda b: (b, 0, 0)),   # streaming patches
                pl.BlockSpec((K, D), lambda b: (0, 0)),           # resident weight
                pl.BlockSpec((N + 1, D), lambda b: (0, 0)),       # resident pos+bias
            ],
            out_specs=pl.BlockSpec((TB, N + 1, D), lambda b: (b, 0, 0)),
        ),
        compiler_params=pltpu.CompilerParams(
            dimension_semantics=("parallel",),
            vmem_limit_bytes=vmem_limit,
        ),
    )(patches, w_mat, posbias)
    return out


def _reference(x, conv_w, conv_b, cls_token, pos_embed, patch_size):
    """Pure-JAX (f32) reference mirroring the PyTorch forward (H == W path)."""
    B, C, H, W = x.shape
    ph, pw = patch_size
    gh, gw = H // ph, W // pw
    N = gh * gw
    D = conv_w.shape[0]
    patches = x.reshape(B, C, gh, ph, gw, pw).transpose(0, 2, 4, 1, 3, 5)
    patches = patches.reshape(B, N, C * ph * pw)
    emb = patches @ conv_w.reshape(D, -1).T + conv_b[None, None, :]
    cls = jnp.broadcast_to(cls_token, (B, 1, D))
    return jnp.concatenate([cls, emb], axis=1) + pos_embed  # dropout(0.0) = identity


if __name__ == "__main__":
    # Small config consistent with the module:
    #   image_size=16, patch_size=4, in_channels=3, embedding_dim=128, batch=4
    image_size = 16
    patch_size = (4, 4)
    in_channels = 3
    embedding_dim = 128
    B = 4

    gh = image_size // patch_size[0]
    gw = image_size // patch_size[1]
    num_patches = gh * gw

    key = jax.random.PRNGKey(0)
    k_x, k_w, k_b, k_cls, k_pos = jax.random.split(key, 5)

    x = jax.random.normal(k_x, (B, in_channels, image_size, image_size), jnp.float32)

    fan_in = in_channels * patch_size[0] * patch_size[1]
    conv_w = jax.random.normal(
        k_w, (embedding_dim, in_channels, patch_size[0], patch_size[1]), jnp.float32
    ) * (1.0 / math.sqrt(fan_in))
    conv_b = jax.random.normal(k_b, (embedding_dim,), jnp.float32) * 0.01
    # trunc_normal_(std=0.02) approximated with a clipped normal (deterministic).
    cls_token = jnp.clip(
        jax.random.normal(k_cls, (1, 1, embedding_dim), jnp.float32) * 0.02, -0.04, 0.04
    )
    pos_embed = jnp.clip(
        jax.random.normal(k_pos, (1, num_patches + 1, embedding_dim), jnp.float32) * 0.02,
        -0.04, 0.04,
    )

    ref = _reference(x, conv_w, conv_b, cls_token, pos_embed, patch_size)

    # 1) exact-semantics check: f32 compute path vs pure-JAX reference.
    out_f32 = vit_patch_embedding(
        x, conv_w, conv_b, cls_token, pos_embed, patch_size, compute_dtype=jnp.float32
    )
    out_f32 = jax.block_until_ready(out_f32)
    assert out_f32.shape == (B, num_patches + 1, embedding_dim), out_f32.shape
    assert jnp.allclose(out_f32, ref, atol=1e-4, rtol=1e-4), float(
        jnp.max(jnp.abs(out_f32 - ref))
    )

    # 2) default optimized path: bf16 streaming data, f32 accumulation.
    out = vit_patch_embedding(x, conv_w, conv_b, cls_token, pos_embed, patch_size)
    out = jax.block_until_ready(out)
    assert out.shape == (B, num_patches + 1, embedding_dim), out.shape
    assert jnp.allclose(out, ref, atol=5e-2, rtol=5e-2), float(
        jnp.max(jnp.abs(out - ref))
    )

    print("KERNEL_OK")
</pallas_src>

<mosaic_0001>
module attributes {stable_mosaic.version = 11 : i64} {
  func.func @_patch_embed_kernel(%arg0: i32, %arg1: memref<2x24x48xf32, #tpu.memory_space<vmem>>, %arg2: memref<48x128xf32, #tpu.memory_space<vmem>>, %arg3: memref<17x128xf32, #tpu.memory_space<vmem>>, %arg4: memref<2x17x128xf32, #tpu.memory_space<vmem>>) attributes {dimension_semantics = [#tpu.dimension_semantics<parallel>], iteration_bounds = array<i64: 2>, scalar_prefetch = 0 : i64, scratch_operands = 0 : i64, tpu.core_type = #tpu.core_type<tc>, window_params = [{transform_indices = @transform_0, window_bounds = array<i64: 2, 24, 48>}, {pipeline_mode = #tpu.pipeline_mode<synchronous>, transform_indices = @transform_1, window_bounds = array<i64: 48, 128>}, {pipeline_mode = #tpu.pipeline_mode<synchronous>, transform_indices = @transform_2, window_bounds = array<i64: 17, 128>}, {transform_indices = @transform_3, window_bounds = array<i64: 2, 17, 128>}]} {
    %c0 = arith.constant 0 : index
    %c0_0 = arith.constant 0 : index
    %c0_1 = arith.constant 0 : index
    %0 = vector.load %arg1[%c0, %c0_0, %c0_1] : memref<2x24x48xf32, #tpu.memory_space<vmem>>, vector<2x24x48xf32>
    %1 = vector.shape_cast %0 : vector<2x24x48xf32> to vector<48x48xf32>
    %c0_2 = arith.constant 0 : index
    %c0_3 = arith.constant 0 : index
    %2 = vector.load %arg2[%c0_2, %c0_3] : memref<48x128xf32, #tpu.memory_space<vmem>>, vector<48x128xf32>
    %cst = arith.constant dense<0.000000e+00> : vector<48x128xf32>
    %3 = tpu.matmul %1, %2, %cst {dimension_numbers = #tpu.dot_dimension_numbers<[1], [0], [0], [1], [0, 0, 1, 1], [], []>} : vector<48x48xf32>, vector<48x128xf32>, vector<48x128xf32> -> vector<48x128xf32>
    %4 = vector.shape_cast %3 : vector<48x128xf32> to vector<2x24x128xf32>
    %5 = vector.extract_strided_slice %4 {offsets = [0, 0, 0], sizes = [2, 17, 128], strides = [1, 1, 1]} : vector<2x24x128xf32> to vector<2x17x128xf32>
    %c0_4 = arith.constant 0 : index
    %c0_5 = arith.constant 0 : index
    %6 = vector.load %arg3[%c0_4, %c0_5] : memref<17x128xf32, #tpu.memory_space<vmem>>, vector<17x128xf32>
    %7 = vector.shape_cast %6 : vector<17x128xf32> to vector<1x17x128xf32>
    %8 = vector.broadcast %7 : vector<1x17x128xf32> to vector<2x17x128xf32>
    %9 = arith.addf %5, %8 : vector<2x17x128xf32>
    %c0_6 = arith.constant 0 : index
    %c0_7 = arith.constant 0 : index
    %c0_8 = arith.constant 0 : index
    %10 = vector.load %arg4[%c0_6, %c0_7, %c0_8] : memref<2x17x128xf32, #tpu.memory_space<vmem>>, vector<2x17x128xf32>
    tpu.vector_store %arg4[%c0_6, %c0_7, %c0_8], %9 {strides = array<i32>} : memref<2x17x128xf32, #tpu.memory_space<vmem>>, vector<2x17x128xf32>,
    return
  }
  func.func @transform_0(%arg0: i32) -> (i32, i32, i32) {
    %c0_i32 = arith.constant 0 : i32
    %c0_i32_0 = arith.constant 0 : i32
    %c0_i32_1 = arith.constant 0 : i32
    return %arg0, %c0_i32, %c0_i32_0 : i32, i32, i32
  }
  func.func @transform_1(%arg0: i32) -> (i32, i32) {
    %c0_i32 = arith.constant 0 : i32
    %c0_i32_0 = arith.constant 0 : i32
    %c0_i32_1 = arith.constant 0 : i32
    return %c0_i32, %c0_i32_0 : i32, i32
  }
  func.func @transform_2(%arg0: i32) -> (i32, i32) {
    %c0_i32 = arith.constant 0 : i32
    %c0_i32_0 = arith.constant 0 : i32
    %c0_i32_1 = arith.constant 0 : i32
    return %c0_i32, %c0_i32_0 : i32, i32
  }
  func.func @transform_3(%arg0: i32) -> (i32, i32, i32) {
    %c0_i32 = arith.constant 0 : i32
    %c0_i32_0 = arith.constant 0 : i32
    %c0_i32_1 = arith.constant 0 : i32
    return %arg0, %c0_i32, %c0_i32_0 : i32, i32, i32
  }
}

</mosaic_0001>

<bundles_post_ra>
// kernel: tpu_custom_call.1
= control target key start
LH: loop header
LB: loop body
LE: loop exit
PB: predicated region body
PF: predicated region fallthrough
CT: control target
= control target key end

     0   :  { %8 = vsyncpa [#allocation3], 0  ;;  %s889_s0 = inlined_call_operand.hbm [shape: f32[4,24,48], index: 0, kind: input, shape index: {}]   ;;  %s890_s1 = inlined_call_operand.hbm [shape: f32[48,128], index: 1, kind: input, shape index: {}]   ;;  %s891_s2 = inlined_call_operand.hbm [shape: f32[17,128], index: 2, kind: input, shape index: {}]   ;;  %s892_s3 = inlined_call_operand.vmem [shape: f32[4,17,128], index: 3, kind: output, shape index: {}]  }
   0x1   :  { %10 = vsyncpa [#allocation3 + $0x1], 0 }
   0x2   :  { %11 = vsyncpa [#allocation5], 0  ;;  %s732_s12 = smov 0   ;;  %s734_s13 = smov 0  }
   0x3   :  { %s736_s14 = smov 0   ;;  %s738_s15 = smov 0  }
   0x4 LB: > { %s454_s16 = sadd.s32 4294967295, %s705_s15   ;;  %p37_p0 = scmp.ne.s32.totalorder %s697_s13, %s693_s12  ;;  %s705_s15 = sphi %s738_s15, %s908_s15   ;;  %s701_s14 = sphi %s736_s14, %s907_s14   ;;  %s697_s13 = sphi %s734_s13, %s906_s13   ;;  %s693_s12 = sphi %s732_s12, %s905_s12  }
   0x5   : > { %p754_p1 = scmp.eq.s32.totalorder %s454_s16, 0  ;;  %p456_p2 = scmp.ge.s32.totalorder %s705_s15, 1 }
   0x6   : > { %p116_p3 = scmp.lt.s32.totalorder %s705_s15, 3  ;;  %s707_s20 = smov [#allocation4]  }
   0x7   : > { %s897_s17 = scalar_select %p754_p1, 1, 0 }
   0x8   : > { %p762_p4 = por %p754_p1, %p37_p0  ;;  %p766_p5 = pnand %p456_p2, %p116_p3 }
   0x9   : > { %s128_s21 = sshll.u32 %s707_s20, 4  ;;  %s708_s23 = smov [#allocation6]   ;;  %s129_s21 = int_to_ptr.vmem [resolvable:$true] %s128_s21 }
   0xa   : > { %s898_s18 = scalar_select %p762_p4, 1, 0 }
   0xb   : > { %s899_s19 = scalar_select %p766_p5, 1, 0 }
   0xc   : > { %p535_p6 = pneg %p766_p5  ;;  %s141_s24 = sshll.u32 %s708_s23, 4  ;;  %s142_s24 = int_to_ptr.vmem [resolvable:$true] %s141_s24 }
   0xd   : > { %s598_s25 = scalar_lea.vmem %s129_s21, 768  ;;  %p606_p12 = scmp.lt.s32.totalorder %s129_s21, %s129_s21 }
   0xe   : > { %p774_p7 = pnand %p535_p6, %p754_p1  ;;  %p599_p9 = scmp.ne.s32.totalorder %s129_s21, %s598_s25 }
   0xf   : > { %p607_p13 = scmp.lt.s32.totalorder %s598_s25, %s598_s25 }
  0x10   : > { %p589_p8 = pneg %p774_p7 }
  0x11   : > { %p608_p0 = por %p607_p13, %p606_p12 }
  0x12   : > { %p601_p10 = pnand %p599_p9, %p589_p8 }
  0x14   : > { %p602_p11 = pneg %p601_p10 }
  0x16   : > { %p609_p2 = pnand %p608_p0, %p602_p11 }
  0x18   : > { %612 = shalt.err (!%p609_p2)
}
  0x19   : > { %s709_s26 = smov 128   ;;  %s710_s27 = smov 8  }
  0x1a   : > { %538 = dma.hbm_to_vmem [thread:$0]  (!%p774_p7), %s890_s1, 768, %s129_s21, [#allocation5], %s709_s26, %s709_s26, %s710_s27  }
  0x1b   : > { %s624_s30 = scalar_lea.vmem %s142_s24, 384  ;;  %p632_p10 = scmp.lt.s32.totalorder %s142_s24, %s142_s24 }
  0x1c   : > { %p625_p3 = scmp.ne.s32.totalorder %s142_s24, %s624_s30  ;;  %p633_p11 = scmp.lt.s32.totalorder %s624_s30, %s624_s30 }
  0x1e   : > { %p627_p6 = pnand %p625_p3, %p589_p8  ;;  %p634_p12 = por %p633_p11, %p632_p10 }
  0x20   : > { %p628_p9 = pneg %p627_p6 }
  0x22   : > { %p635_p13 = pnand %p634_p12, %p628_p9 }
  0x24   : > { %638 = shalt.err (!%p635_p13)
}
  0x25   : > { %541 = dma.hbm_to_vmem [thread:$0]  (!%p774_p7), %s891_s2, 384, %s142_s24, [#allocation5], %s709_s26, %s709_s26, %s710_s27  }
  0x26   : > { %s803_s6 = sadd.s32 1, %s705_s15   ;;  %s24_s7 = sadd.s32 1, %s701_s14 }
  0x27   : > { %s21_s8 = ssub.s32 %s705_s15, %s803_s6  ;;  %p31_p8 = scmp.ne.s32.totalorder %s701_s14, %s697_s13 }
  0x28   : > { %p22_p0 = scmp.eq.s32.totalorder %s21_s8, 0  ;;  %p32_p2 = scmp.eq.s32.totalorder %s705_s15, 0 }
  0x29   : > { %p548_p3 = scmp.lt.s32.totalorder %s705_s15, 2  ;;  %s155_s9 = sand.u32 1, %s701_s14  }
  0x2a   : > { %s814_s10 = scalar_select %p22_p0, %s701_s14, %s24_s7  }
  0x2b   : > { %p33_p6 = por %p32_p2, %p31_p8  ;;  %s521_s11 = smul.u32 48, %s155_s9 }
  0x2c   : > { %s522_s12 = smul.u32 768, %s705_s15  ;;  %s828_s28 = scalar_lea.sflag [#allocation3], %s155_s9 }
  0x2d   : > { %p817_p9 = pnand %p548_p3, %p33_p6  ;;  %s159_s24 = scalar_lea.vmem [#allocation2], %s521_s11 }
  0x2e   : > { %s824_s23 = scalar_lea.hbm %s889_s0, %s522_s12  ;;  %s167_s25 = sshll.u32 %s159_s24, 4  ;;  %s826_s25 = int_to_ptr.vmem [resolvable:$true] %s167_s25 }
  0x2f   : > { %s639_s29 = scalar_lea.hbm %s824_s23, 768  ;;  %p641_p10 = pneg %p817_p9 }
  0x30   : > { %p640_p7 = scmp.ne.s32.totalorder %s824_s23, %s639_s29  ;;  %s644_s5 = scalar_lea.hbm %s889_s0, 1536 }
  0x31   : > { %p645_p13 = scmp.lt.s32.totalorder %s824_s23, %s889_s0  ;;  %p646_p8 = scmp.lt.s32.totalorder %s644_s5, %s639_s29 }
  0x32   : > { %p642_p11 = pnand %p641_p10, %p640_p7 }
  0x33   : > { %p647_p0 = por %p646_p8, %p645_p13 }
  0x34   : > { %p643_p12 = pneg %p642_p11 }
  0x36   : > { %p648_p2 = pnand %p647_p0, %p643_p12 }
  0x38   : > { %651 = shalt.err (!%p648_p2)
}
  0x39   : > { %s652_s9 = scalar_lea.vmem %s826_s25, 768  ;;  %s711_s11 = smov [#allocation2]  }
  0x3a   : > { %p653_p3 = scmp.ne.s32.totalorder %s826_s25, %s652_s9  ;;  %s657_s12 = sshll.u32 %s711_s11, 4  ;;  %s658_s12 = int_to_ptr.vmem [resolvable:$false] %s657_s12 }
  0x3b   : > { %s659_s21 = scalar_lea.vmem %s658_s12, 1536  ;;  %p660_p11 = scmp.lt.s32.totalorder %s826_s25, %s658_s12 }
  0x3c   : > { %p655_p6 = pnand %p653_p3, %p641_p10  ;;  %p661_p1 = scmp.lt.s32.totalorder %s659_s21, %s652_s9 }
  0x3e   : > { %p656_p7 = pneg %p655_p6  ;;  %p662_p4 = por %p661_p1, %p660_p11 }
  0x40   : > { %p663_p5 = pnand %p662_p4, %p656_p7 }
  0x42   : > { %666 = shalt.err (!%p663_p5)
}
  0x43   : > { %545 = dma.hbm_to_vmem [thread:$0]  (!%p817_p9), %s824_s23, 768, %s826_s25, %s828_s28, %s709_s26, %s709_s26, %s710_s27  }
  0x44   : > { %p902_p10 = scmp.ne.s32.totalorder %s899_s19, 0 }
  0x45   : > { %s181_s22 = sand.u32 (!%p902_p10), 1, %s697_s13   ;;  %p903_p1 = scmp.ne.s32.totalorder (!%p902_p10), %s898_s18, 0 }
  0x46   : > { %179 = sbr.rel (%p902_p10) target bundleno = 295 (0x127), region = 32  ;;  %s182_s29 = scalar_lea.sflag (!%p902_p10), [#allocation3], %s181_s22 }
  0x47   : > { %s523_s24 = smul.u32 (!%p902_p10), 48, %s181_s22 }
  0x49   : > { %s855_s30 = scalar_lea.vmem (!%p902_p10), [#allocation2], %s523_s24 }
  0x4b   : > { %684 = dma.done.wait (%p903_p1), %s182_s29, 768  }
  0x4c   : > { %686 = vsyncadd (%p903_p1), %s182_s29, 4294966528  ;;  %p904_p4 = scmp.ne.s32.totalorder %s897_s17, 0 }
  0x4e   : > { %688 = dma.done.wait (%p904_p4), [#allocation5], 1152  }
  0x4f   : > { %690 = vsyncadd (%p904_p4), [#allocation5], 4294966144  ;;  %v236_v0 = vld [vmem:[#allocation4 + $0x28] sm:$0xff]  ;;  %v235_v1 = vld [vmem:[#allocation4 + $0x20] sm:$0xff]  ;;  %vm237_vm0 = vcmask 392192   ;;  %s466_s17 = sshll.u32 %s454_s16, 1 }
  0x50   : > { %488 = vmatprep.subr.mxu0 %v236_v0  ;;  %509 = vmatprep.subr.mxu1 %v236_v0  ;;  %v234_v2 = vld [vmem:[#allocation4 + $0x18] sm:$0xff]  ;;  %v233_v3 = vld [vmem:[#allocation4 + $0x10] sm:$0xff]  ;;  %v232_v4 = vld [vmem:[#allocation4 + $0x8] sm:$0xff]  ;;  %p219_p5 = scmp.lt.s32.totalorder %s466_s17, 3 }
  0x51   : > { %489 = vmatpush3.msra.mxu0 %v236_v0  ;;  %515 = vmatpush3.msra.mxu1 %v236_v0  ;;  %v231_v5 = vld [vmem:[#allocation4] sm:$0xff]  ;;  %v226_v8 = vld [vmem:[%s855_s30 + $0x8] sm:$0xff]  ;;  %v228_v9 = vld [vmem:[%s855_s30 + $0x18] sm:$0xff] }
  0x52   : > { %490 = vmatprep.subr.mxu0 %v235_v1  ;;  %510 = vmatprep.subr.mxu1 %v235_v1  ;;  %v225_v6 = vld [vmem:[%s855_s30] sm:$0xff]  ;;  %v227_v7 = vld [vmem:[%s855_s30 + $0x10] sm:$0xff]  ;;  %v230_v11 = vld [vmem:[%s855_s30 + $0x28] sm:$0xff]  ;;  %s910_s17 = smov (!%p219_p5, %s466_s17), 3 }
  0x53   : > { %491 = vmatpush3.msra.mxu0 %v235_v1  ;;  %516 = vmatpush3.msra.mxu1 %v235_v1  ;;  %v229_v10 = vld [vmem:[%s855_s30 + $0x20] sm:$0xff]  ;;  %s524_s18 = smul.u32 24, %s910_s17  ;;  %v352_v12 = vld [vmem:[#allocation6 + $0x8] sm:$0xff] }
  0x54   : > { %492 = vmatprep.subr.mxu0 %v234_v2  ;;  %511 = vmatprep.subr.mxu1 %v234_v2  ;;  %v353_v15 = vld [vmem:[#allocation6 + $0x10] sm:$0x1]  ;;  %v351_v17 = vld [vmem:[#allocation6] sm:$0xff] }
  0x55   : > { %493 = vmatpush3.msra.mxu0 %v234_v2  ;;  %517 = vmatpush3.msra.mxu1 %v234_v2  ;;  %s223_s27 = scalar_lea.vmem %s892_s3, %s524_s18 }
  0x56   : > { %494 = vmatprep.subr.mxu0 %v233_v3  ;;  %512 = vmatprep.subr.mxu1 %v233_v3 }
  0x57   : > { %495 = vmatpush3.msra.mxu0 %v233_v3  ;;  %518 = vmatpush3.msra.mxu1 %v233_v3 }
  0x58   : > { %496 = vmatprep.subr.mxu0 %v232_v4  ;;  %513 = vmatprep.subr.mxu1 %v232_v4 }
  0x59   : > { %497 = vmatpush3.msra.mxu0 %v232_v4  ;;  %519 = vmatpush3.msra.mxu1 %v232_v4 }
  0x5a   : > { %498 = vmatprep.subr.mxu0 %v231_v5  ;;  %514 = vmatprep.subr.mxu1 %v231_v5 }
  0x5b   : > { %499 = vmatpush3.msra.mxu0 %v231_v5  ;;  %520 = vmatpush3.msra.mxu1 %v231_v5 }
  0x5c   : > { %500 = vmatprep.mubr.msk.f32.mxu0 %vm237_vm0, %v225_v6  ;;  %503 = vmatprep.mubr.msk.f32.mxu1 %vm237_vm0, %v227_v7 }
  0x5d   : > { %501 = vmatmul.mubr.msk.f32.vlgmr.msra.gmra.mxu0 %vm237_vm0, %v226_v8  ;;  %504 = vmatmul.mubr.msk.f32.vlgmr.msra.gmra.mxu1 %vm237_vm0, %v228_v9 }
  0x5e   : > { %506 = vmatprep.mubr.msk.f32.mxu1 %vm237_vm0, %v229_v10 }
  0x61   : > { %507 = vmatmul.mubr.msk.f32.gmra.mxu1 %vm237_vm0, %v230_v11 }
 0x11d   : > { %v502_v13 = vpop.f32.mrf.mxu0  ;;  %v505_v14 = vpop.f32.mrf.mxu1 }
 0x11e   : > { %v355_v16 = vadd.f32 %v502_v13, %v352_v12  ;;  %v357_v22 = vadd.f32 %v505_v14, %v351_v17 }
 0x11f   : > { %v322_v18 = vpop.f32.mrf.mxu0  ;;  %v332_v19 = vpop.f32.mrf.mxu1 }
 0x120   : > { %361 = vst [vmem:[%s223_s27 + $0x8] sm:$0xff] %v355_v16  ;;  %v354_v20 = vadd.f32 %v351_v17, %v322_v18  ;;  %v356_v21 = vadd.f32 %v353_v15, %v332_v19  ;;  %363 = vst [vmem:[%s223_s27 + $0x18] sm:$0xff] %v357_v22 }
 0x121   : > { %v508_v23 = vpop.f32.mrf.mxu1 }
 0x122   : > { %360 = vst [vmem:[%s223_s27] sm:$0xff] %v354_v20  ;;  %362 = vst [vmem:[%s223_s27 + $0x10] sm:$0x1] %v356_v21  ;;  %v359_v24 = vadd.f32 %v508_v23, %v353_v15 }
 0x123   : > { %v342_v25 = vpop.f32.mrf.mxu1 }
 0x124   : > { %365 = vst [vmem:[%s223_s27 + $0x28] sm:$0x1] %v359_v24  ;;  %v358_v26 = vadd.f32 %v352_v12, %v342_v25 }
 0x126   : > { %364 = vst [vmem:[%s223_s27 + $0x20] sm:$0xff] %v358_v26 }
 0x127 PF: > { %p14_p9 = scmp.ge.s32.totalorder %s803_s6, 4   ;;  %s905_s12 = smov %s697_s13 }
 0x128   : > { %s906_s13 = smov %s701_s14  ;;  %s907_s14 = smov %s814_s10 }
 0x129   : > { %s908_s15 = smov %s803_s6  ;;  %16 = sbr.rel (!%p14_p9) target bundleno = 4 (0x4), region = 80 }
 0x12e   :  { %390 = vsyncpa [#allocation3], 1 }
 0x12f   :  { %392 = vsyncpa [#allocation3 + $0x1], 1 }
 0x130   :  { %393 = vsyncpa [#allocation5], 1 }

</bundles_post_ra>
